<compile_context>
chip_gen: v5e
topology: v5e:2x2
jax: 0.10.0
libtpu: 0.0.40
codegen_flags: <defaults>
</compile_context>

<pallas_src>
import numpy as np
import jax
import jax.numpy as jnp
from jax.experimental import pallas as pl
from jax.experimental.pallas import tpu as pltpu

# ----------------------------- model dimensions -----------------------------
B = 2                      # batch
C = 16                     # num_electrodes == input_dim (pairwise_weights length)
T = 32                     # chunk_size
F1, D, F2 = 8, 2, 16
K1, K2 = 8, 4
PAD1, PAD2 = K1 // 2, K2 // 2
NC = 4                     # num_classes
T1 = T + 2 * PAD1 - K1 + 1             # width after block-1 temporal conv   (33)
TP1 = (T1 - 4) // 4 + 1                # width after AvgPool2d((1,4), 4)     (8)
T2 = TP1 + 2 * PAD2 - K2 + 1           # width after block-2 depthwise conv  (9)
TP2 = (T2 - 8) // 8 + 1                # width after AvgPool2d((1,8), 8)     (1)
CH = F1 * D                            # 16
TPAD = T + 2 * PAD1                    # 40
TP1P = TP1 + 2 * PAD2                  # 12  (block-2 input incl. zero padding)
EPS = 1e-3                             # torcheeg EEGNet BatchNorm eps
THRESH = 0.2                           # Thresholded_Linear threshold

# ------------------ packed weight slab layout (one f32 operand) ------------------
WROWS, WCOLS = 64, 128                 # (64,128) f32 = 32 KB, single lane-dense DMA
COL_WD, COL_W1, COL_SH1, COL_W2 = 0, 16, 24, 32
COL_WP, COL_SH3, COL_WPAIR = 40, 56, 64
ROW_POOL1, ROW_LIN = 16, 56            # 8-aligned sublane starts


def _elu(x):  # PyTorch ELU(alpha=1)
    return jnp.where(x > 0, x, jnp.exp(jnp.minimum(x, 0.0)) - 1.0)


# =============================================================================
# Fused per-sample kernel: NeuralFS feature selection + full EEGNet (eval mode).
# Grid = (B,), one sample per step; channels on sublanes, time on lanes.
#   x_ref : (1, 1, C, T)   raw NCHW input block for this sample
#   w_ref : (WROWS, WCOLS) packed weight slab (shared, constant index_map)
#   o_ref : (1, NC, 1)     logits for this sample
# Slab contents (carved with static slices):
#   rows 0:16  cols  0:16  wd       depthwise spatial conv (max-norm applied)
#              cols 16:24  w1_eff   block-1 temporal taps with BN1*BN2 folded
#              cols 24     sh1      folded BN1/BN2 shift
#              cols 32:36  w2       block-2 depthwise temporal taps
#              cols 40:56  wp_fold  pointwise conv with BN3 scale folded
#              cols 56     sh3      BN3 shift
#              cols 64     wpair    NeuralFS pairwise weights
#   rows 16:49 cols  0:12  pool1    AvgPool(1,4) matrix, zero border = block-2 pad
#   rows 56:60 cols  0:16  lin      final Linear (TP2 == 1 so weight is (NC, F2))
# =============================================================================
def neuralfs_eegnet_kernel(x_ref, w_ref, o_ref):
    x = x_ref[...].reshape(C, T)                              # (C, T)

    # carve the packed slab (static slices == zero-cost views)
    wpair = w_ref[0:C,  COL_WPAIR:COL_WPAIR + 1]              # (C, 1)
    wd    = w_ref[0:CH, COL_WD:COL_WD + C]                    # (CH, C)
    w1    = w_ref[0:CH, COL_W1:COL_W1 + K1]                   # (CH, K1)
    sh1   = w_ref[0:CH, COL_SH1:COL_SH1 + 1]                  # (CH, 1)
    w2    = w_ref[0:CH, COL_W2:COL_W2 + K2]                   # (CH, K2)
    wp    = w_ref[0:F2, COL_WP:COL_WP + CH]                   # (F2, CH)
    sh3   = w_ref[0:F2, COL_SH3:COL_SH3 + 1]                  # (F2, 1)
    pool1 = w_ref[ROW_POOL1:ROW_POOL1 + T1, 0:TP1P]           # (T1, TP1P)
    lin   = w_ref[ROW_LIN:ROW_LIN + NC, 0:F2]                 # (NC, F2)

    # ---------------- NeuralFS feature selection (elementwise) ----------------
    gate = (1.0 / (1.0 + jnp.exp(-x))) * wpair                # sigmoid * per-channel w
    thr = jnp.where(jnp.abs(gate) > THRESH, gate, 0.0)        # Thresholded_Linear
    sel = x * thr                                             # (C, T)

    # fused "same"-conv zero pad on the time axis (data already in VMEM)
    zpad = jnp.zeros((C, PAD1), jnp.float32)
    selp = jnp.concatenate([zpad, sel, zpad], axis=-1)        # (C, TPAD)

    # ---------------- EEGNet block 1 (reassociated) ----------------
    # spatial depthwise conv first (one matmul), then the K1 temporal taps (VPU)
    a = jnp.dot(wd, selp, preferred_element_type=jnp.float32)   # (CH, TPAD)
    z1 = w1[:, 0:1] * a[:, 0:T1]
    for k in range(1, K1):                                    # unrolled madd taps
        z1 = z1 + w1[:, k:k + 1] * a[:, k:k + T1]
    z1 = _elu(z1 + sh1)                                       # (CH, T1)
    # AvgPool2d((1,4),4); pool matrix emits the zero-padded block-2 input directly
    p1 = jnp.dot(z1, pool1, preferred_element_type=jnp.float32)  # (CH, TP1P)

    # ---------------- EEGNet block 2 ----------------
    z2 = w2[:, 0:1] * p1[:, 0:T2]
    for k in range(1, K2):                                    # depthwise (1,K2) taps
        z2 = z2 + w2[:, k:k + 1] * p1[:, k:k + T2]            # (CH, T2)
    pw = _elu(jnp.dot(wp, z2, preferred_element_type=jnp.float32) + sh3)  # (F2, T2)

    # ---------------- Linear before AvgPool(1,8) (they commute) ----------------
    y = jnp.dot(lin, pw, preferred_element_type=jnp.float32)  # (NC, T2) — no N=1 MXU op
    pooled = jnp.sum(y[:, 0:8], axis=-1, keepdims=True) * 0.125   # XLU lane reduce
    o_ref[...] = pooled.reshape(1, NC, 1)                     # layout-preserving


def neuralfs_eegnet_forward(x, slab):
    """x: (B, 1, C, T) NCHW -> (B, NC) logits."""
    out = pl.pallas_call(
        neuralfs_eegnet_kernel,
        out_shape=jax.ShapeDtypeStruct((B, NC, 1), jnp.float32),
        grid_spec=pltpu.PrefetchScalarGridSpec(
            num_scalar_prefetch=0,
            grid=(B,),
            in_specs=[
                pl.BlockSpec((1, 1, C, T), lambda b: (b, 0, 0, 0)),
                # constant block index -> slab DMA'd once, VMEM-resident across steps
                pl.BlockSpec((WROWS, WCOLS), lambda b: (0, 0)),
            ],
            out_specs=pl.BlockSpec((1, NC, 1), lambda b: (b, 0, 0)),
        ),
        compiler_params=pltpu.CompilerParams(
            dimension_semantics=("parallel",)),            # v7x: 2 TCs share the batch
    )(x, slab)
    return out.reshape(B, NC)


# ----------------------- deterministic parameter setup -----------------------
def build_params():
    rng = np.random.default_rng(0)

    def rnd(shape, scale):
        return (scale * rng.standard_normal(shape)).astype(np.float32)

    # NeuralFS pairwise weights: torch.nn.init.uniform_ -> U(0, 1)
    w_pair = rng.uniform(0.0, 1.0, size=(C,)).astype(np.float32)

    raw = {}
    raw['w1'] = rnd((F1, K1), 0.3)
    raw['g1'] = (1.0 + rnd((F1,), 0.1)).astype(np.float32)
    raw['be1'] = rnd((F1,), 0.1)
    raw['m1'] = rnd((F1,), 0.05)
    raw['v1'] = (1.0 + 0.1 * np.abs(rng.standard_normal(F1))).astype(np.float32)

    wd_raw = rnd((CH, C), 0.3)
    # Conv2dWithConstraint(max_norm=1): renorm along the output-channel dim
    norms = np.sqrt((wd_raw ** 2).sum(axis=1, keepdims=True))
    raw['wd'] = (wd_raw * np.minimum(1.0, 1.0 / np.maximum(norms, 1e-12))).astype(np.float32)
    raw['g2'] = (1.0 + rnd((CH,), 0.1)).astype(np.float32)
    raw['be2'] = rnd((CH,), 0.1)
    raw['m2'] = rnd((CH,), 0.05)
    raw['v2'] = (1.0 + 0.1 * np.abs(rng.standard_normal(CH))).astype(np.float32)

    raw['w2'] = rnd((CH, K2), 0.3)
    raw['wp'] = rnd((F2, CH), 0.3)
    raw['g3'] = (1.0 + rnd((F2,), 0.1)).astype(np.float32)
    raw['be3'] = rnd((F2,), 0.1)
    raw['m3'] = rnd((F2,), 0.05)
    raw['v3'] = (1.0 + 0.1 * np.abs(rng.standard_normal(F2))).astype(np.float32)
    raw['lin_w'] = rnd((NC, F2 * TP2), 0.3)

    # ---- fold eval-mode BatchNorms (block-1 reassociation) ----
    s1 = raw['g1'] / np.sqrt(raw['v1'] + EPS); sb1 = raw['be1'] - raw['m1'] * s1
    s2 = raw['g2'] / np.sqrt(raw['v2'] + EPS); sb2 = raw['be2'] - raw['m2'] * s2
    s3 = raw['g3'] / np.sqrt(raw['v3'] + EPS); sb3 = raw['be3'] - raw['m3'] * s3

    f_of_j = np.arange(CH) // D                               # depthwise group of row j
    # z_bn[j,t] = sum_k (s2[j]*s1[f]*w1[f,k]) * (wd@x)[j,t+k]
    #           + (s2[j]*sb1[f]*sum_c wd[j,c] + sb2[j])
    w1_eff = (s2[:, None] * s1[f_of_j][:, None] * raw['w1'][f_of_j, :]).astype(np.float32)
    sh1 = (s2 * sb1[f_of_j] * raw['wd'].sum(axis=1) + sb2).astype(np.float32)
    wp_fold = (raw['wp'] * s3[:, None]).astype(np.float32)
    sh3 = sb3.astype(np.float32)

    # AvgPool(1,4) matrix; its zero border columns supply block-2's zero padding
    pool1 = np.zeros((T1, TP1P), np.float32)
    for p in range(TP1):
        pool1[4 * p:4 * p + 4, PAD2 + p] = 0.25

    # -------- pack everything into ONE lane-aligned f32 slab (single DMA) --------
    slab = np.zeros((WROWS, WCOLS), np.float32)
    slab[0:CH, COL_WD:COL_WD + C] = raw['wd']
    slab[0:CH, COL_W1:COL_W1 + K1] = w1_eff
    slab[0:CH, COL_SH1] = sh1
    slab[0:CH, COL_W2:COL_W2 + K2] = raw['w2']
    slab[0:F2, COL_WP:COL_WP + CH] = wp_fold
    slab[0:F2, COL_SH3] = sh3
    slab[0:C, COL_WPAIR] = w_pair
    slab[ROW_POOL1:ROW_POOL1 + T1, 0:TP1P] = pool1
    slab[ROW_LIN:ROW_LIN + NC, 0:F2] = raw['lin_w'].reshape(NC, F2)   # TP2 == 1

    return w_pair, raw, jnp.asarray(slab)


# ---------------------- pure-JAX reference (unfolded math) ----------------------
def reference_forward(x, w_pair, e):
    xs = x[:, 0]                                              # (B, C, T)
    nl = 1.0 / (1.0 + jnp.exp(-xs))
    gate = nl * jnp.asarray(w_pair)[None, :, None]
    thr = jnp.where((gate > THRESH) | (gate < -THRESH), gate, 0.0)
    sel = xs * thr

    xpad = jnp.pad(sel, ((0, 0), (0, 0), (PAD1, PAD1)))
    y1 = jnp.zeros((B, F1, C, T1))
    for k in range(K1):
        y1 = y1 + jnp.asarray(e['w1'])[None, :, None, k:k + 1] * xpad[:, None, :, k:k + T1]
    y1 = ((y1 - e['m1'][None, :, None, None]) / np.sqrt(e['v1'] + EPS)[None, :, None, None]
          * e['g1'][None, :, None, None] + e['be1'][None, :, None, None])
    y1g = jnp.repeat(y1, D, axis=1)                           # (B, CH, C, T1)
    z = jnp.einsum('bjct,jc->bjt', y1g, jnp.asarray(e['wd']))
    z = ((z - e['m2'][None, :, None]) / np.sqrt(e['v2'] + EPS)[None, :, None]
         * e['g2'][None, :, None] + e['be2'][None, :, None])
    z = jnp.where(z > 0, z, jnp.exp(jnp.minimum(z, 0.0)) - 1.0)
    zp = z[..., :TP1 * 4].reshape(B, CH, TP1, 4).mean(-1)

    zpad = jnp.pad(zp, ((0, 0), (0, 0), (PAD2, PAD2)))
    z2 = jnp.zeros((B, CH, T2))
    for k in range(K2):
        z2 = z2 + jnp.asarray(e['w2'])[None, :, k:k + 1] * zpad[:, :, k:k + T2]
    pw = jnp.einsum('bjt,mj->bmt', z2, jnp.asarray(e['wp']))
    pw = ((pw - e['m3'][None, :, None]) / np.sqrt(e['v3'] + EPS)[None, :, None]
          * e['g3'][None, :, None] + e['be3'][None, :, None])
    pw = jnp.where(pw > 0, pw, jnp.exp(jnp.minimum(pw, 0.0)) - 1.0)
    p2 = pw[..., :TP2 * 8].reshape(B, F2, TP2, 8).mean(-1)    # (B, F2, TP2)
    feat = p2.reshape(B, F2 * TP2)
    return feat @ jnp.asarray(e['lin_w']).T


if __name__ == "__main__":
    key = jax.random.PRNGKey(0)
    x = jax.random.normal(key, (B, 1, C, T), dtype=jnp.float32)   # (B, 1, C, T) NCHW

    w_pair, raw_eeg, slab = build_params()

    fwd = jax.jit(lambda xx: neuralfs_eegnet_forward(xx, slab))
    out = jax.block_until_ready(fwd(x))                           # (B, NC) logits

    ref = jax.block_until_ready(reference_forward(x, w_pair, raw_eeg))
    np.testing.assert_allclose(np.asarray(out), np.asarray(ref), rtol=2e-2, atol=2e-2)

    print("KERNEL_OK")
</pallas_src>

<mosaic_0001>
module attributes {stable_mosaic.version = 11 : i64} {
  func.func @neuralfs_eegnet_kernel(%arg0: i32, %arg1: memref<1x1x16x32xf32, #tpu.memory_space<vmem>>, %arg2: memref<64x128xf32, #tpu.memory_space<vmem>>, %arg3: memref<1x4x1xf32, #tpu.memory_space<vmem>>) attributes {dimension_semantics = [#tpu.dimension_semantics<parallel>], iteration_bounds = array<i64: 2>, scalar_prefetch = 0 : i64, scratch_operands = 0 : i64, tpu.core_type = #tpu.core_type<tc>, window_params = [{transform_indices = @transform_0, window_bounds = array<i64: 1, 1, 16, 32>}, {pipeline_mode = #tpu.pipeline_mode<synchronous>, transform_indices = @transform_1, window_bounds = array<i64: 64, 128>}, {transform_indices = @transform_2, window_bounds = array<i64: 1, 4, 1>}]} {
    %c0 = arith.constant 0 : index
    %c0_0 = arith.constant 0 : index
    %c0_1 = arith.constant 0 : index
    %c0_2 = arith.constant 0 : index
    %0 = vector.load %arg1[%c0, %c0_0, %c0_1, %c0_2] : memref<1x1x16x32xf32, #tpu.memory_space<vmem>>, vector<1x1x16x32xf32>
    %1 = vector.shape_cast %0 : vector<1x1x16x32xf32> to vector<16x32xf32>
    %c0_3 = arith.constant 0 : index
    %c64 = arith.constant 64 : index
    %2 = vector.load %arg2[%c0_3, %c64] : memref<64x128xf32, #tpu.memory_space<vmem>>, vector<16x1xf32>
    %c0_4 = arith.constant 0 : index
    %c0_5 = arith.constant 0 : index
    %3 = vector.load %arg2[%c0_4, %c0_5] : memref<64x128xf32, #tpu.memory_space<vmem>>, vector<16x16xf32>
    %c0_6 = arith.constant 0 : index
    %c16 = arith.constant 16 : index
    %4 = vector.load %arg2[%c0_6, %c16] : memref<64x128xf32, #tpu.memory_space<vmem>>, vector<16x8xf32>
    %c0_7 = arith.constant 0 : index
    %c24 = arith.constant 24 : index
    %5 = vector.load %arg2[%c0_7, %c24] : memref<64x128xf32, #tpu.memory_space<vmem>>, vector<16x1xf32>
    %c0_8 = arith.constant 0 : index
    %c32 = arith.constant 32 : index
    %6 = vector.load %arg2[%c0_8, %c32] : memref<64x128xf32, #tpu.memory_space<vmem>>, vector<16x4xf32>
    %c0_9 = arith.constant 0 : index
    %c40 = arith.constant 40 : index
    %7 = vector.load %arg2[%c0_9, %c40] : memref<64x128xf32, #tpu.memory_space<vmem>>, vector<16x16xf32>
    %c0_10 = arith.constant 0 : index
    %c56 = arith.constant 56 : index
    %8 = vector.load %arg2[%c0_10, %c56] : memref<64x128xf32, #tpu.memory_space<vmem>>, vector<16x1xf32>
    %c16_11 = arith.constant 16 : index
    %c0_12 = arith.constant 0 : index
    %9 = vector.load %arg2[%c16_11, %c0_12] : memref<64x128xf32, #tpu.memory_space<vmem>>, vector<33x12xf32>
    %c56_13 = arith.constant 56 : index
    %c0_14 = arith.constant 0 : index
    %10 = vector.load %arg2[%c56_13, %c0_14] : memref<64x128xf32, #tpu.memory_space<vmem>>, vector<4x16xf32>
    %cst = arith.constant 0.000000e+00 : f32
    %11 = vector.broadcast %cst : f32 to vector<16x32xf32>
    %12 = arith.subf %11, %1 : vector<16x32xf32>
    %13 = math.exp %12 : vector<16x32xf32>
    %cst_15 = arith.constant 1.000000e+00 : f32
    %14 = vector.broadcast %cst_15 : f32 to vector<16x32xf32>
    %15 = arith.addf %14, %13 : vector<16x32xf32>
    %cst_16 = arith.constant 1.000000e+00 : f32
    %16 = vector.broadcast %cst_16 : f32 to vector<16x32xf32>
    %17 = arith.divf %16, %15 : vector<16x32xf32>
    %18 = vector.broadcast %2 : vector<16x1xf32> to vector<16x32xf32>
    %19 = arith.mulf %17, %18 : vector<16x32xf32>
    %20 = math.absf %19 : vector<16x32xf32>
    %cst_17 = arith.constant 2.000000e-01 : f32
    %21 = vector.broadcast %cst_17 : f32 to vector<16x32xf32>
    %22 = arith.cmpf ogt, %20, %21 : vector<16x32xf32>
    %cst_18 = arith.constant 0.000000e+00 : f32
    %23 = vector.broadcast %cst_18 : f32 to vector<16x32xf32>
    %24 = arith.select %22, %19, %23 : vector<16x32xi1>, vector<16x32xf32>
    %25 = arith.mulf %1, %24 : vector<16x32xf32>
    %cst_19 = arith.constant 0.000000e+00 : f32
    %26 = vector.broadcast %cst_19 : f32 to vector<16x4xf32>
    %27 = tpu.concatenate %26, %25, %26 in 1 : vector<16x4xf32>, vector<16x32xf32>, vector<16x4xf32> -> vector<16x40xf32>
    %cst_20 = arith.constant dense<0.000000e+00> : vector<16x40xf32>
    %28 = tpu.matmul %3, %27, %cst_20 {dimension_numbers = #tpu.dot_dimension_numbers<[1], [0], [0], [1], [0, 0, 1, 1], [], []>} : vector<16x16xf32>, vector<16x40xf32>, vector<16x40xf32> -> vector<16x40xf32>
    %29 = vector.extract_strided_slice %4 {offsets = [0, 0], sizes = [16, 1], strides = [1, 1]} : vector<16x8xf32> to vector<16x1xf32>
    %30 = vector.extract_strided_slice %28 {offsets = [0, 0], sizes = [16, 33], strides = [1, 1]} : vector<16x40xf32> to vector<16x33xf32>
    %31 = vector.broadcast %29 : vector<16x1xf32> to vector<16x33xf32>
    %32 = arith.mulf %31, %30 : vector<16x33xf32>
    %33 = vector.extract_strided_slice %4 {offsets = [0, 1], sizes = [16, 1], strides = [1, 1]} : vector<16x8xf32> to vector<16x1xf32>
    %34 = vector.extract_strided_slice %28 {offsets = [0, 1], sizes = [16, 33], strides = [1, 1]} : vector<16x40xf32> to vector<16x33xf32>
    %35 = vector.broadcast %33 : vector<16x1xf32> to vector<16x33xf32>
    %36 = arith.mulf %35, %34 : vector<16x33xf32>
    %37 = arith.addf %32, %36 : vector<16x33xf32>
    %38 = vector.extract_strided_slice %4 {offsets = [0, 2], sizes = [16, 1], strides = [1, 1]} : vector<16x8xf32> to vector<16x1xf32>
    %39 = vector.extract_strided_slice %28 {offsets = [0, 2], sizes = [16, 33], strides = [1, 1]} : vector<16x40xf32> to vector<16x33xf32>
    %40 = vector.broadcast %38 : vector<16x1xf32> to vector<16x33xf32>
    %41 = arith.mulf %40, %39 : vector<16x33xf32>
    %42 = arith.addf %37, %41 : vector<16x33xf32>
    %43 = vector.extract_strided_slice %4 {offsets = [0, 3], sizes = [16, 1], strides = [1, 1]} : vector<16x8xf32> to vector<16x1xf32>
    %44 = vector.extract_strided_slice %28 {offsets = [0, 3], sizes = [16, 33], strides = [1, 1]} : vector<16x40xf32> to vector<16x33xf32>
    %45 = vector.broadcast %43 : vector<16x1xf32> to vector<16x33xf32>
    %46 = arith.mulf %45, %44 : vector<16x33xf32>
    %47 = arith.addf %42, %46 : vector<16x33xf32>
    %48 = vector.extract_strided_slice %4 {offsets = [0, 4], sizes = [16, 1], strides = [1, 1]} : vector<16x8xf32> to vector<16x1xf32>
    %49 = vector.extract_strided_slice %28 {offsets = [0, 4], sizes = [16, 33], strides = [1, 1]} : vector<16x40xf32> to vector<16x33xf32>
    %50 = vector.broadcast %48 : vector<16x1xf32> to vector<16x33xf32>
    %51 = arith.mulf %50, %49 : vector<16x33xf32>
    %52 = arith.addf %47, %51 : vector<16x33xf32>
    %53 = vector.extract_strided_slice %4 {offsets = [0, 5], sizes = [16, 1], strides = [1, 1]} : vector<16x8xf32> to vector<16x1xf32>
    %54 = vector.extract_strided_slice %28 {offsets = [0, 5], sizes = [16, 33], strides = [1, 1]} : vector<16x40xf32> to vector<16x33xf32>
    %55 = vector.broadcast %53 : vector<16x1xf32> to vector<16x33xf32>
    %56 = arith.mulf %55, %54 : vector<16x33xf32>
    %57 = arith.addf %52, %56 : vector<16x33xf32>
    %58 = vector.extract_strided_slice %4 {offsets = [0, 6], sizes = [16, 1], strides = [1, 1]} : vector<16x8xf32> to vector<16x1xf32>
    %59 = vector.extract_strided_slice %28 {offsets = [0, 6], sizes = [16, 33], strides = [1, 1]} : vector<16x40xf32> to vector<16x33xf32>
    %60 = vector.broadcast %58 : vector<16x1xf32> to vector<16x33xf32>
    %61 = arith.mulf %60, %59 : vector<16x33xf32>
    %62 = arith.addf %57, %61 : vector<16x33xf32>
    %63 = vector.extract_strided_slice %4 {offsets = [0, 7], sizes = [16, 1], strides = [1, 1]} : vector<16x8xf32> to vector<16x1xf32>
    %64 = vector.extract_strided_slice %28 {offsets = [0, 7], sizes = [16, 33], strides = [1, 1]} : vector<16x40xf32> to vector<16x33xf32>
    %65 = vector.broadcast %63 : vector<16x1xf32> to vector<16x33xf32>
    %66 = arith.mulf %65, %64 : vector<16x33xf32>
    %67 = arith.addf %62, %66 : vector<16x33xf32>
    %68 = vector.broadcast %5 : vector<16x1xf32> to vector<16x33xf32>
    %69 = arith.addf %67, %68 : vector<16x33xf32>
    %cst_21 = arith.constant 0.000000e+00 : f32
    %70 = vector.broadcast %cst_21 : f32 to vector<16x33xf32>
    %71 = arith.cmpf ogt, %69, %70 : vector<16x33xf32>
    %cst_22 = arith.constant 0.000000e+00 : f32
    %72 = vector.broadcast %cst_22 : f32 to vector<16x33xf32>
    %73 = arith.minimumf %69, %72 : vector<16x33xf32>
    %74 = math.exp %73 : vector<16x33xf32>
    %cst_23 = arith.constant 1.000000e+00 : f32
    %75 = vector.broadcast %cst_23 : f32 to vector<16x33xf32>
    %76 = arith.subf %74, %75 : vector<16x33xf32>
    %77 = arith.select %71, %69, %76 : vector<16x33xi1>, vector<16x33xf32>
    %cst_24 = arith.constant dense<0.000000e+00> : vector<16x12xf32>
    %78 = tpu.matmul %77, %9, %cst_24 {dimension_numbers = #tpu.dot_dimension_numbers<[1], [0], [0], [1], [0, 0, 1, 1], [], []>} : vector<16x33xf32>, vector<33x12xf32>, vector<16x12xf32> -> vector<16x12xf32>
    %79 = vector.extract_strided_slice %6 {offsets = [0, 0], sizes = [16, 1], strides = [1, 1]} : vector<16x4xf32> to vector<16x1xf32>
    %80 = vector.extract_strided_slice %78 {offsets = [0, 0], sizes = [16, 9], strides = [1, 1]} : vector<16x12xf32> to vector<16x9xf32>
    %81 = vector.broadcast %79 : vector<16x1xf32> to vector<16x9xf32>
    %82 = arith.mulf %81, %80 : vector<16x9xf32>
    %83 = vector.extract_strided_slice %6 {offsets = [0, 1], sizes = [16, 1], strides = [1, 1]} : vector<16x4xf32> to vector<16x1xf32>
    %84 = vector.extract_strided_slice %78 {offsets = [0, 1], sizes = [16, 9], strides = [1, 1]} : vector<16x12xf32> to vector<16x9xf32>
    %85 = vector.broadcast %83 : vector<16x1xf32> to vector<16x9xf32>
    %86 = arith.mulf %85, %84 : vector<16x9xf32>
    %87 = arith.addf %82, %86 : vector<16x9xf32>
    %88 = vector.extract_strided_slice %6 {offsets = [0, 2], sizes = [16, 1], strides = [1, 1]} : vector<16x4xf32> to vector<16x1xf32>
    %89 = vector.extract_strided_slice %78 {offsets = [0, 2], sizes = [16, 9], strides = [1, 1]} : vector<16x12xf32> to vector<16x9xf32>
    %90 = vector.broadcast %88 : vector<16x1xf32> to vector<16x9xf32>
    %91 = arith.mulf %90, %89 : vector<16x9xf32>
    %92 = arith.addf %87, %91 : vector<16x9xf32>
    %93 = vector.extract_strided_slice %6 {offsets = [0, 3], sizes = [16, 1], strides = [1, 1]} : vector<16x4xf32> to vector<16x1xf32>
    %94 = vector.extract_strided_slice %78 {offsets = [0, 3], sizes = [16, 9], strides = [1, 1]} : vector<16x12xf32> to vector<16x9xf32>
    %95 = vector.broadcast %93 : vector<16x1xf32> to vector<16x9xf32>
    %96 = arith.mulf %95, %94 : vector<16x9xf32>
    %97 = arith.addf %92, %96 : vector<16x9xf32>
    %cst_25 = arith.constant dense<0.000000e+00> : vector<16x9xf32>
    %98 = tpu.matmul %7, %97, %cst_25 {dimension_numbers = #tpu.dot_dimension_numbers<[1], [0], [0], [1], [0, 0, 1, 1], [], []>} : vector<16x16xf32>, vector<16x9xf32>, vector<16x9xf32> -> vector<16x9xf32>
    %99 = vector.broadcast %8 : vector<16x1xf32> to vector<16x9xf32>
    %100 = arith.addf %98, %99 : vector<16x9xf32>
    %cst_26 = arith.constant 0.000000e+00 : f32
    %101 = vector.broadcast %cst_26 : f32 to vector<16x9xf32>
    %102 = arith.cmpf ogt, %100, %101 : vector<16x9xf32>
    %cst_27 = arith.constant 0.000000e+00 : f32
    %103 = vector.broadcast %cst_27 : f32 to vector<16x9xf32>
    %104 = arith.minimumf %100, %103 : vector<16x9xf32>
    %105 = math.exp %104 : vector<16x9xf32>
    %cst_28 = arith.constant 1.000000e+00 : f32
    %106 = vector.broadcast %cst_28 : f32 to vector<16x9xf32>
    %107 = arith.subf %105, %106 : vector<16x9xf32>
    %108 = arith.select %102, %100, %107 : vector<16x9xi1>, vector<16x9xf32>
    %cst_29 = arith.constant dense<0.000000e+00> : vector<4x9xf32>
    %109 = tpu.matmul %10, %108, %cst_29 {dimension_numbers = #tpu.dot_dimension_numbers<[1], [0], [0], [1], [0, 0, 1, 1], [], []>} : vector<4x16xf32>, vector<16x9xf32>, vector<4x9xf32> -> vector<4x9xf32>
    %110 = vector.extract_strided_slice %109 {offsets = [0, 0], sizes = [4, 8], strides = [1, 1]} : vector<4x9xf32> to vector<4x8xf32>
    %cst_30 = arith.constant dense<0.000000e+00> : vector<4xf32>
    %111 = vector.multi_reduction <add>, %110, %cst_30 [1] : vector<4x8xf32> to vector<4xf32>
    %112 = vector.shape_cast %111 : vector<4xf32> to vector<4x1xf32>
    %cst_31 = arith.constant 1.250000e-01 : f32
    %113 = vector.broadcast %cst_31 : f32 to vector<4x1xf32>
    %114 = arith.mulf %112, %113 : vector<4x1xf32>
    %115 = vector.shape_cast %114 : vector<4x1xf32> to vector<1x4x1xf32>
    %c0_32 = arith.constant 0 : index
    %c0_33 = arith.constant 0 : index
    %c0_34 = arith.constant 0 : index
    %116 = vector.load %arg3[%c0_32, %c0_33, %c0_34] : memref<1x4x1xf32, #tpu.memory_space<vmem>>, vector<1x4x1xf32>
    tpu.vector_store %arg3[%c0_32, %c0_33, %c0_34], %115 {strides = array<i32>} : memref<1x4x1xf32, #tpu.memory_space<vmem>>, vector<1x4x1xf32>,
    return
  }
  func.func @transform_0(%arg0: i32) -> (i32, i32, i32, i32) {
    %c0_i32 = arith.constant 0 : i32
    %c0_i32_0 = arith.constant 0 : i32
    %c0_i32_1 = arith.constant 0 : i32
    %c0_i32_2 = arith.constant 0 : i32
    return %arg0, %c0_i32, %c0_i32_0, %c0_i32_1 : i32, i32, i32, i32
  }
  func.func @transform_1(%arg0: i32) -> (i32, i32) {
    %c0_i32 = arith.constant 0 : i32
    %c0_i32_0 = arith.constant 0 : i32
    %c0_i32_1 = arith.constant 0 : i32
    return %c0_i32, %c0_i32_0 : i32, i32
  }
  func.func @transform_2(%arg0: i32) -> (i32, i32, i32) {
    %c0_i32 = arith.constant 0 : i32
    %c0_i32_0 = arith.constant 0 : i32
    %c0_i32_1 = arith.constant 0 : i32
    return %arg0, %c0_i32, %c0_i32_0 : i32, i32, i32
  }
}

</mosaic_0001>

<bundles_post_ra>
// kernel: _lambda_.1
= control target key start
LH: loop header
LB: loop body
LE: loop exit
PB: predicated region body
PF: predicated region fallthrough
CT: control target
= control target key end

     0   :  { %7 = vsyncpa [#allocation3], 0  ;;  %s1191_s0 = inlined_call_operand.hbm [shape: f32[2,1,16,32], index: 0, kind: input, shape index: {}]   ;;  %s1192_s1 = inlined_call_operand.hbm [shape: f32[64,128], index: 1, kind: input, shape index: {}]   ;;  %s1193_s2 = inlined_call_operand.vmem [shape: f32[2,4,1], index: 2, kind: output, shape index: {}]  }
   0x1   :  { %9 = vsyncpa [#allocation3 + $0x1], 0 }
   0x2   :  { %10 = vsyncpa [#allocation5], 0  ;;  %s1013_s9 = smov 0   ;;  %s1015_s10 = smov 0  }
   0x3   :  { %s1017_s11 = smov 0   ;;  %s1019_s12 = smov 0  }
   0x4 LB: > { %s1032_s13 = sadd.s32 4294967295, %s969_s12   ;;  %p36_p0 = scmp.ne.s32.totalorder %s961_s10, %s957_s9  ;;  %s969_s12 = sphi %s1019_s12, %s1200_s12   ;;  %s965_s11 = sphi %s1017_s11, %s1199_s11   ;;  %s961_s10 = sphi %s1015_s10, %s1198_s10   ;;  %s957_s9 = sphi %s1013_s9, %s1197_s9  }
   0x5   : > { %p37_p1 = scmp.eq.s32.totalorder %s1032_s13, 0  ;;  %p724_p2 = scmp.ge.s32.totalorder %s969_s12, 1 }
   0x6   : > { %p94_p3 = scmp.lt.s32.totalorder %s969_s12, 3  ;;  %s105_s17 = sshll.u32 %s1192_s1, 4  ;;  %s106_s17 = int_to_ptr.hbm [resolvable:$true] %s105_s17 }
   0x7   : > { %p1040_p4 = por %p37_p1, %p36_p0  ;;  %s971_s19 = smov [#allocation4]  }
   0x8   : > { %p1047_p5 = pnand %p724_p2, %p94_p3  ;;  %s107_s20 = sshll.u32 %s971_s19, 4  ;;  %s108_s20 = int_to_ptr.vmem [resolvable:$true] %s107_s20 }
   0x9   : > { %s1056_s21 = sadd.s32 1, %s969_s12   ;;  %s972_s22 = smov 128  }
   0xa   : > { %p757_p6 = pneg %p1047_p5  ;;  %s973_s23 = smov 8  }
   0xb   : > { %s20_s24 = ssub.s32 %s969_s12, %s1056_s21  ;;  %s23_s25 = sadd.s32 1, %s965_s11 }
   0xc   : > { %p758_p7 = pnand %p757_p6, %p37_p1  ;;  %p21_p8 = scmp.eq.s32.totalorder %s20_s24, 0 }
   0xd   : > { %p30_p9 = scmp.ne.s32.totalorder %s965_s11, %s961_s10  ;;  %p31_p10 = scmp.eq.s32.totalorder %s969_s12, 0 }
   0xe   : > { %760 = dma.hbm_to_vmem [thread:$0]  (!%p758_p7), %s106_s17, 1024, %s108_s20, [#allocation5], %s972_s22, %s972_s22, %s973_s23  }
   0xf   : > { %p766_p11 = scmp.lt.s32.totalorder %s969_s12, 2  ;;  %p32_p12 = por %p31_p10, %p30_p9 }
  0x10   : > { %s1069_s26 = scalar_select %p21_p8, %s965_s11, %s23_s25  }
  0x11   : > { %s121_s27 = sand.u32 1, %s965_s11   ;;  %s750_s29 = sshll.u32 %s969_s12, 4 }
  0x12   : > { %s727_s28 = sshll.u32 %s121_s27, 4  ;;  %s130_s4 = scalar_lea.hbm %s1191_s0, %s750_s29 }
  0x13   : > { %s125_s5 = scalar_lea.vmem [#allocation2], %s727_s28  ;;  %s131_s7 = sshll.u32 %s130_s4, 4  ;;  %s132_s7 = int_to_ptr.hbm [resolvable:$true] %s131_s7 }
  0x14   : > { %s133_s6 = sshll.u32 %s125_s5, 4  ;;  %p1076_p13 = pnand %p766_p11, %p32_p12  ;;  %s134_s6 = int_to_ptr.vmem [resolvable:$true] %s133_s6 }
  0x15   : > { %s122_s9 = scalar_lea.sflag [#allocation3], %s121_s27  ;;  %s901_s15 = sshra.s32 %s132_s7, 4  ;;  %s902_s15 = int_to_ptr.hbm [resolvable:$true] %s901_s15 }
  0x16   : > { %s903_s16 = scalar_lea.hbm %s902_s15, 16  ;;  %p905_p2 = pneg %p1076_p13 }
  0x17   : > { %p904_p0 = scmp.ne.s32.totalorder %s902_s15, %s903_s16  ;;  %s908_s19 = scalar_lea.hbm %s1191_s0, 32 }
  0x18   : > { %p909_p7 = scmp.lt.s32.totalorder %s902_s15, %s1191_s0  ;;  %p910_p8 = scmp.lt.s32.totalorder %s908_s19, %s903_s16 }
  0x19   : > { %p906_p3 = pnand %p905_p2, %p904_p0 }
  0x1a   : > { %p911_p9 = por %p910_p8, %p909_p7 }
  0x1b   : > { %p907_p6 = pneg %p906_p3 }
  0x1d   : > { %p912_p10 = pnand %p911_p9, %p907_p6 }
  0x1f   : > { %915 = shalt.err (!%p912_p10)
}
  0x20   : > { %764 = dma.hbm_to_vmem [thread:$0]  (!%p1076_p13), %s132_s7, 256, %s134_s6, %s122_s9, %s972_s22, %s972_s22, %s973_s23  }
  0x21   : > { %145 = sbr.rel (%p1047_p5) target bundleno = 1254 (0x4e6), region = 28  ;;  %s147_s25 = sand.u32 (!%p1047_p5), 1, %s961_s10  }
  0x22   : > { %s731_s27 = sshll.u32 (!%p1047_p5), %s147_s25, 4  ;;  %s148_s28 = scalar_lea.sflag (!%p1047_p5), [#allocation3], %s147_s25 }
  0x23   : > { %s151_s29 = scalar_lea.vmem (!%p1047_p5), [#allocation2], %s731_s27 }
  0x26   : > { %948 = dma.done.wait (%p1040_p4), %s148_s28, 256  }
  0x27   : > { %950 = vsyncadd (%p1040_p4), %s148_s28, 4294967040 }
  0x28   : > { %952 = dma.done.wait (%p37_p1), [#allocation5], 1024  }
  0x29   : > { %954 = vsyncadd (%p37_p1), [#allocation5], 4294966272  ;;  %v974_v0 = vmov 64   ;;  %v1104_v1 = vld [vmem:[#allocation4 + $0x8] sm:$0xff]  ;;  %v1107_v2 = vld [vmem:[#allocation4] sm:$0xff]  ;;  %v975_v17 = vmov 17  }
  0x2a   : > { %827 = vset.pattern.permute.xlu0 %v974_v0  ;;  %v182_v3 = vld [vmem:[%s151_s29 + $0x8] sm:$0xff]  ;;  %v181_v6 = vld [vmem:[%s151_s29] sm:$0xff]  ;;  %828 = vset.pattern.permute.xlu2 %v975_v17  ;;  %v976_v27 = vmov 18   ;;  %s977_s14 = smov 4   ;;  %v978_v45 = vmov 20   ;;  %v979_v46 = vmov 19  }
  0x2b   : > { %236 = vperm.xlu0 %827, %v1104_v1   ;;  %v192_v4 = vsub.f32 0.0, %v182_v3  ;;  %v191_v7 = vsub.f32 0.0, %v181_v6  ;;  %302 = vperm.xlu2 %828, %v1107_v2   ;;  %v980_v47 = vmov 21   ;;  %v981_v48 = vmov 23   ;;  %s985_s18 = smov 125   ;;  %s986_s22 = smov 126  }
  0x2c   : > { %831 = vset.pattern.permute.xlu1 %v978_v45  ;;  %v982_v49 = vmov 22   ;;  %vm257_vm10 = vcmask 31744   ;;  %vm260_vm11 = vcmask 293888   ;;  %v983_v52 = vmov 16   ;;  %s987_s23 = smov 127   ;;  %s988_s30 = smov 121  }
  0x2d   : > { %v195_v5 = vmul.f32 1.442695, %v192_v4  ;;  %v193_v8 = vmul.f32 1.442695, %v191_v7  ;;  %vm263_vm12 = vcmask 130048   ;;  %v984_v55 = vmov 24  }
  0x2e   : > { %s989_s3 = smov 124   ;;  %s990_s4 = smov 122   ;;  %vm470_vm13 = vcmask 1040384   ;;  %vm463_vm14 = vcmask 269312  }
  0x2f   : > { %855 = vpow2.f32 %v195_v5  ;;  %s991_s5 = smov 123   ;;  %s996_s6 = smov 88  }
  0x30   : > { %857 = vpow2.f32 %v193_v8  ;;  %p177_p1 = scmp.lt.s32.totalorder %s1032_s13, 1 }
  0x32   : > { %s1202_s13 = smov (!%p177_p1, %s1032_s13), 1 }
  0x33   : > { %231 = vperm.xlu0 %827, %v1107_v2   ;;  %829 = vset.pattern.permute.xlu2 %v976_v27  ;;  %s733_s7 = sshll.u32 %s1202_s13, 2 }
  0x34   : > { %322 = vperm.xlu2 %829, %v1107_v2   ;;  %s180_s15 = scalar_lea.vmem %s1193_s2, %s733_s7 }
  0x35   : > { %v856_v9 = vpop.eup %855 }
  0x36   : > { %v198_v10 = vadd.f32 1.0, %v856_v9  ;;  %v858_v11 = vpop.eup %857 }
  0x37   : > { %v197_v12 = vadd.f32 1.0, %v858_v11 }
  0x38   : > { %859 = vrcp.f32 %v198_v10  ;;  %vm219_vm0 = vweird.f32 %v198_v10  ;;  %v225_v20 = vand.u32 2147483648, %v198_v10  ;;  %v223_v22 = vand.u32 2147483647, %v198_v10 }
  0x39   : > { %861 = vrcp.f32 %v197_v12  ;;  %vm204_vm4 = vweird.f32 %v197_v12  ;;  %v210_v29 = vand.u32 2147483648, %v197_v12  ;;  %v208_v31 = vand.u32 2147483647, %v197_v12 }
  0x3a   : > { %v226_v24 = vor.u32 1.1754944e-38, %v225_v20  ;;  %vm224_vm3 = vcmp.eq.f32.partialorder %v223_v22, 8.507059e+37 }
  0x3b   : > { %v211_v34 = vor.u32 1.1754944e-38, %v210_v29  ;;  %vm209_vm7 = vcmp.eq.f32.partialorder %v208_v31, 8.507059e+37  ;;  %830 = vset.pattern.permute.xlu0 %v979_v46  ;;  %v189_v29 = vld [vmem:[#allocation4 + $0x30] sm:$0x1] }
  0x3c   : > { %832 = vset.pattern.permute.xlu2 %v975_v17  ;;  %342 = vperm.xlu0 %830, %v1107_v2  }
  0x3d   : > { %306 = vperm.xlu2 %832, %v1104_v1   ;;  %740 = vmatpush.msk.msra.mxu1 %vm470_vm13, %v189_v29 }
  0x3e   : > { %v860_v13 = vpop.eup %859 }
  0x3f   : > { %v215_v14 = vmul.f32 %v860_v13, %v198_v10  ;;  %v862_v16 = vpop.eup %861  ;;  %vm220_vm1 = vweird.f32 %v860_v13 }
  0x40   : > { %v200_v19 = vmul.f32 %v862_v16, %v197_v12  ;;  %vm221_vm2 = vmor %vm219_vm0, %vm220_vm1  ;;  %vm205_vm5 = vweird.f32 %v862_v16 }
  0x41   : > { %v216_v15 = vsub.f32 1.0, %v215_v14  ;;  %vm206_vm6 = vmor %vm204_vm4, %vm205_vm5  ;;  %vm646_vm4 = vcmask 3072  }
  0x42   : > { %v201_v23 = vsub.f32 1.0, %v200_v19 }
  0x43   : > { %v217_v18 = vmul.f32 %v860_v13, %v216_v15 }
  0x44   : > { %v202_v26 = vmul.f32 %v862_v16, %v201_v23  ;;  %835 = vset.pattern.permute.xlu0 %v982_v49  ;;  %v994_v49 = vmov 35  }
  0x45   : > { %v218_v21 = vadd.f32 %v860_v13, %v217_v18  ;;  %834 = vset.pattern.permute.xlu2 %v976_v27  ;;  %402 = vperm.xlu0 %835, %v1107_v2  }
  0x46   : > { %v203_v30 = vadd.f32 %v862_v16, %v202_v26  ;;  %326 = vperm.xlu2 %834, %v1104_v1  }
  0x47   : > { %v222_v25 = vsel %vm221_vm2, %v860_v13, %v218_v21 }
  0x48   : > { %v227_v28 = vsel %vm224_vm3, %v226_v24, %v222_v25  ;;  %v207_v36 = vsel %vm206_vm6, %v862_v16, %v203_v30  ;;  %v188_v30 = vld [vmem:[#allocation4 + $0x28] sm:$0xff]  ;;  %vm641_vm3 = vcmask 60416  }
  0x49   : > { %v212_v37 = vsel %vm209_vm7, %v211_v34, %v207_v36  ;;  %486 = vmatpush.msra.mxu1 %v188_v30  ;;  %v186_v36 = vld [vmem:[#allocation4 + $0x18] sm:$0xff] }
  0x4d   : > { %406 = vperm.xlu0 %835, %v1104_v1  }
  0x4e   : > { %837 = vset.pattern.permute.xlu2 %v981_v48 }
  0x4f   : > { %422 = vperm.xlu2 %837, %v1107_v2  }
  0x55   : > { %842 = vset.pattern.permute.xlu0 %v983_v52 }
  0x56   : > { %296 = vperm.xlu0 %842, %v1104_v1  }
  0x57   : > { %839 = vset.pattern.permute.xlu2 %v980_v47 }
  0x58   : > { %386 = vperm.xlu2 %839, %v1104_v1  }
  0x60   : > { %841 = vset.pattern.permute.xlu2 %v983_v52 }
  0x61   : > { %292 = vperm.xlu2 %841, %v1107_v2  }
  0x69   : > { %844 = vset.pattern.permute.xlu2 %v984_v55 }
  0x85   : > { %v303_v56 = vpop.permute.xlu2 %302 }
  0x8e   : > { %v323_v57 = vpop.permute.xlu2 %322 }
  0x97   : > { %v307_v59 = vpop.permute.xlu2 %306 }
  0x9d   : > { %v237_v32 = vpop.permute.xlu0 %236 }
  0x9e   : > { %v240_v33 = vmul.f32 %v237_v32, %v227_v28 }
  0xa0   : > { %v242_v35 = vand.u32 2147483647, %v240_v33  ;;  %v327_v62 = vpop.permute.xlu2 %326 }
  0xa2   : > { %vm244_vm8 = vcmp.gt.f32.partialorder %v242_v35, 0.2 }
  0xa3   : > { %v246_v38 = vsel %vm244_vm8, %v240_v33, 0.0  ;;  %v187_v33 = vld [vmem:[#allocation4 + $0x20] sm:$0xff] }
  0xa4   : > { %v248_v39 = vmul.f32 %v246_v38, %v182_v3  ;;  %487 = vmatpush.msra.mxu1 %v187_v33  ;;  %v185_v38 = vld [vmem:[#allocation4 + $0x10] sm:$0xff]  ;;  %v997_v33 = vmov 56  }
  0xa5   : > { %v232_v40 = vpop.permute.xlu0 %231 }
  0xa6   : > { %v239_v41 = vmul.f32 %v232_v40, %v212_v37  ;;  %253 = vrot.lane.b32.xlu1 %v248_v39, %s977_s14  ;;  %488 = vmatpush.msra.mxu1 %v186_v36 }
  0xa8   : > { %v241_v42 = vand.u32 2147483647, %v239_v41  ;;  %489 = vmatpush.msra.mxu1 %v185_v38 }
  0xa9   : > { %v423_v7 = vpop.permute.xlu2 %422 }
  0xaa   : > { %vm243_vm9 = vcmp.gt.f32.partialorder %v241_v42, 0.2 }
  0xab   : > { %v245_v43 = vsel %vm243_vm9, %v239_v41, 0.0  ;;  %v992_v41 = vmov 33  }
  0xac   : > { %v247_v44 = vmul.f32 %v245_v43, %v181_v6  ;;  %845 = vset.pattern.permute.xlu0 %v992_v41  ;;  %v993_v43 = vmov 34  }
  0xae   : > { %251 = vrot.lane.b32.xlu1 %v247_v44, %s977_s14  ;;  %v343_v61 = vpop.permute.xlu0 %342 }
  0xb2   : > { %v387_v21 = vpop.permute.xlu2 %386 }
  0xb6   : > { %362 = vperm.xlu1 %831, %v1107_v2  }
  0xb7   : > { %v403_v6 = vpop.permute.xlu0 %402 }
  0xbb   : > { %v293_v24 = vpop.permute.xlu2 %292 }
  0xbe   : > { %833 = vset.pattern.permute.xlu1 %v980_v47 }
  0xbf   : > { %382 = vperm.xlu1 %833, %v1107_v2   ;;  %v407_v16 = vpop.permute.xlu0 %406 }
  0xc7   : > { %836 = vset.pattern.permute.xlu1 %v979_v46 }
  0xc8   : > { %346 = vperm.xlu1 %836, %v1104_v1   ;;  %v297_v27 = vpop.permute.xlu0 %296 }
  0xd0   : > { %838 = vset.pattern.permute.xlu1 %v978_v45 }
  0xd1   : > { %366 = vperm.xlu1 %838, %v1104_v1  }
  0xd9   : > { %840 = vset.pattern.permute.xlu1 %v981_v48 }
  0xda   : > { %426 = vperm.xlu1 %840, %v1104_v1  }
  0xe2   : > { %843 = vset.pattern.permute.xlu1 %v984_v55 }
  0xe3   : > { %442 = vperm.xlu1 %843, %v1107_v2  }
  0xeb   : > { %846 = vset.pattern.permute.xlu1 %v992_v41 }
 0x118   : > { %v254_v50 = vpop.permute.xlu1 %253 }
 0x119   : > { %v259_v51 = vsel %vm257_vm10, 0.0, %v254_v50 }
 0x11a   : > { %734 = vmatpush.msk.msra.mxu0 %vm260_vm11, %v259_v51 }
 0x120   : > { %v252_v53 = vpop.permute.xlu1 %251 }
 0x121   : > { %v258_v54 = vsel %vm257_vm10, 0.0, %v252_v53 }
 0x122   : > { %735 = vmatpush.msk.msra.mxu0 %vm260_vm11, %v258_v54 }
 0x123   : > { %736 = vmatmul.msk.f32.vlgmr.msra.gmra.mxu0 %vm263_vm12, %v1107_v2 }
 0x128   : > { %v363_v58 = vpop.permute.xlu1 %362 }
 0x12b   : > { %737 = vmatmul.msk.f32.gmra.mxu0 %vm263_vm12, %v1104_v1 }
 0x131   : > { %v383_v60 = vpop.permute.xlu1 %382 }
 0x13a   : > { %v347_v5 = vpop.permute.xlu1 %346 }
 0x143   : > { %v367_v12 = vpop.permute.xlu1 %366 }
 0x14c   : > { %v427_v20 = vpop.permute.xlu1 %426 }
 0x155   : > { %v443_v26 = vpop.permute.xlu1 %442 }
 0x1a0   : > { %v285_v63 = vpop.f32.mrf.mxu0 }
 0x1a1   : > { %v349_v0 = vmul.f32 %v343_v61, %v285_v63  ;;  %v329_v3 = vmul.f32 %v323_v57, %v285_v63  ;;  %v309_v4 = vmul.f32 %v303_v56, %v285_v63  ;;  %v429_v8 = vmul.f32 %v423_v7, %v285_v63 }
 0x1a2   : > { %v369_v9 = vmul.f32 %v363_v58, %v285_v63  ;;  %v409_v10 = vmul.f32 %v403_v6, %v285_v63  ;;  %v389_v15 = vmul.f32 %v383_v60, %v285_v63  ;;  %v299_v34 = vmul.f32 %v293_v24, %v285_v63 }
 0x1a3   : > { %353 = vrot.lane.b32.xlu2 %v349_v0, %s985_s18  ;;  %333 = vrot.lane.b32.xlu1 %v329_v3, %s986_s22  ;;  %v995_v63 = vmov 32  }
 0x1a4   : > { %313 = vrot.lane.b32.xlu0 %v309_v4, %s987_s23 }
 0x1a8   : > { %v1138_v11 = vpop.f32.mrf.mxu0 }
 0x1a9   : > { %v370_v13 = vmul.f32 %v367_v12, %v1138_v11  ;;  %v310_v14 = vmul.f32 %v307_v59, %v1138_v11  ;;  %v330_v17 = vmul.f32 %v327_v62, %v1138_v11  ;;  %v350_v18 = vmul.f32 %v347_v5, %v1138_v11 }
 0x1aa   : > { %v410_v19 = vmul.f32 %v407_v16, %v1138_v11  ;;  %v430_v22 = vmul.f32 %v427_v20, %v1138_v11  ;;  %v390_v23 = vmul.f32 %v387_v21, %v1138_v11  ;;  %v300_v50 = vmul.f32 %v297_v27, %v1138_v11 }
 0x1ab   : > { %433 = vrot.lane.b32.xlu2 %v429_v8, %s988_s30  ;;  %373 = vrot.lane.b32.xlu1 %v369_v9, %s989_s3 }
 0x1ac   : > { %413 = vrot.lane.b32.xlu0 %v409_v10, %s990_s4 }
 0x1b3   : > { %315 = vrot.lane.b32.xlu2 %v310_v14, %s987_s23  ;;  %393 = vrot.lane.b32.xlu1 %v389_v15, %s991_s5 }
 0x1b4   : > { %375 = vrot.lane.b32.xlu0 %v370_v13, %s989_s3 }
 0x1bb   : > { %335 = vrot.lane.b32.xlu2 %v330_v17, %s986_s22  ;;  %355 = vrot.lane.b32.xlu1 %v350_v18, %s985_s18 }
 0x1bc   : > { %415 = vrot.lane.b32.xlu0 %v410_v19, %s990_s4 }
 0x1c3   : > { %395 = vrot.lane.b32.xlu2 %v390_v23, %s991_s5  ;;  %435 = vrot.lane.b32.xlu1 %v430_v22, %s988_s30 }
 0x1c4   : > { %512 = vperm.xlu0 %845, %v1104_v1  }
 0x1cb   : > { %446 = vperm.xlu2 %844, %v1104_v1   ;;  %508 = vperm.xlu1 %846, %v1107_v2  }
 0x1cc   : > { %850 = vset.pattern.permute.xlu0 %v994_v49 }
 0x1cd   : > { %548 = vperm.xlu0 %850, %v1107_v2  }
 0x1d3   : > { %847 = vset.pattern.permute.xlu2 %v993_v43  ;;  %848 = vset.pattern.permute.xlu1 %v993_v43 }
 0x1d4   : > { %532 = vperm.xlu2 %847, %v1104_v1   ;;  %528 = vperm.xlu1 %848, %v1107_v2  }
 0x1d5   : > { %853 = vset.pattern.permute.xlu0 %v997_v33 }
 0x1dc   : > { %849 = vset.pattern.permute.xlu2 %v994_v49  ;;  %851 = vset.pattern.permute.xlu1 %v995_v63 }
 0x1dd   : > { %552 = vperm.xlu2 %849, %v1104_v1   ;;  %502 = vperm.xlu1 %851, %v1104_v1  }
 0x1e5   : > { %852 = vset.pattern.permute.xlu2 %v995_v63  ;;  %854 = vset.pattern.permute.xlu1 %v997_v33  ;;  %v190_v63 = vld [vmem:[#allocation4 + $0x38] sm:$0xf] }
 0x1e6   : > { %498 = vperm.xlu2 %852, %v1107_v2  }
 0x1fd   : > { %v354_v25 = vpop.permute.xlu2 %353 }
 0x205   : > { %v434_v28 = vpop.permute.xlu2 %433 }
 0x20d   : > { %v316_v35 = vpop.permute.xlu2 %315 }
 0x20e   : > { %v320_v53 = vadd.f32 %v316_v35, %v300_v50 }
 0x215   : > { %v334_v31 = vpop.permute.xlu1 %333  ;;  %v336_v45 = vpop.permute.xlu2 %335 }
 0x216   : > { %v314_v32 = vpop.permute.xlu0 %313  ;;  %v340_v55 = vadd.f32 %v336_v45, %v320_v53 }
 0x217   : > { %v319_v37 = vadd.f32 %v314_v32, %v299_v34 }
 0x219   : > { %v339_v40 = vadd.f32 %v334_v31, %v319_v37 }
 0x21b   : > { %v359_v44 = vadd.f32 %v354_v25, %v339_v40 }
 0x21d   : > { %v374_v39 = vpop.permute.xlu1 %373  ;;  %v396_v57 = vpop.permute.xlu2 %395 }
 0x21e   : > { %v414_v42 = vpop.permute.xlu0 %413  ;;  %v379_v46 = vadd.f32 %v374_v39, %v359_v44 }
 0x225   : > { %v394_v47 = vpop.permute.xlu1 %393  ;;  %v447_v6 = vpop.permute.xlu2 %446 }
 0x226   : > { %v399_v48 = vadd.f32 %v394_v47, %v379_v46  ;;  %v376_v52 = vpop.permute.xlu0 %375 }
 0x228   : > { %v419_v51 = vadd.f32 %v414_v42, %v399_v48 }
 0x22a   : > { %v439_v54 = vadd.f32 %v434_v28, %v419_v51 }
 0x22c   : > { %v449_v56 = vadd.f32 %v443_v26, %v439_v54 }
 0x22d   : > { %v356_v58 = vpop.permute.xlu1 %355 }
 0x22e   : > { %v360_v59 = vadd.f32 %v356_v58, %v340_v55  ;;  %v453_v60 = vmin.f32 %v449_v56, 0.0  ;;  %v416_v3 = vpop.permute.xlu0 %415  ;;  %vm451_vm15 = vcmp.gt.f32.partialorder %v449_v56, 0.0  ;;  %v533_v20 = vpop.permute.xlu2 %532 }
 0x230   : > { %v380_v61 = vadd.f32 %v376_v52, %v360_v59  ;;  %v455_v62 = vmul.f32 1.442695, %v453_v60 }
 0x232   : > { %v400_v0 = vadd.f32 %v396_v57, %v380_v61  ;;  %863 = vpow2.f32 %v455_v62 }
 0x234   : > { %v420_v4 = vadd.f32 %v416_v3, %v400_v0 }
 0x235   : > { %v436_v5 = vpop.permute.xlu1 %435 }
 0x236   : > { %v440_v7 = vadd.f32 %v436_v5, %v420_v4  ;;  %v513_v21 = vpop.permute.xlu0 %512 }
 0x237   : > { %v553_v22 = vpop.permute.xlu2 %552 }
 0x238   : > { %v864_v8 = vpop.eup %863  ;;  %v450_v9 = vadd.f32 %v447_v6, %v440_v7 }
 0x239   : > { %v738_v10 = vadd.f32 -1.0, %v864_v8 }
 0x23a   : > { %v454_v11 = vmin.f32 %v450_v9, 0.0  ;;  %vm452_vm0 = vcmp.gt.f32.partialorder %v450_v9, 0.0 }
 0x23b   : > { %v461_v12 = vsel %vm451_vm15, %v449_v56, %v738_v10 }
 0x23c   : > { %v457_v13 = vmul.f32 1.442695, %v454_v11  ;;  %741 = vmatmul.msk.f32.vlgmr.msra.gmra.mxu1 %vm463_vm14, %v461_v12 }
 0x23d   : > { %v509_v17 = vpop.permute.xlu1 %508 }
 0x23e   : > { %865 = vpow2.f32 %v457_v13 }
 0x23f   : > { %v549_v27 = vpop.permute.xlu0 %548 }
 0x240   : > { %v499_v31 = vpop.permute.xlu2 %498 }
 0x244   : > { %v866_v14 = vpop.eup %865 }
 0x245   : > { %v739_v15 = vadd.f32 -1.0, %v866_v14 }
 0x246   : > { %v529_v28 = vpop.permute.xlu1 %528 }
 0x247   : > { %v462_v16 = vsel %vm452_vm0, %v450_v9, %v739_v15 }
 0x248   : > { %742 = vmatmul.msk.f32.gmra.mxu1 %vm463_vm14, %v462_v16 }
 0x24f   : > { %v503_v32 = vpop.permute.xlu1 %502 }
 0x2b9   : > { %v491_v18 = vpop.f32.mrf.mxu1 }
 0x2ba   : > { %v515_v19 = vmul.f32 %v509_v17, %v491_v18  ;;  %v535_v29 = vmul.f32 %v529_v28, %v491_v18  ;;  %v555_v30 = vmul.f32 %v549_v27, %v491_v18  ;;  %v505_v41 = vmul.f32 %v499_v31, %v491_v18 }
 0x2bc   : > { %519 = vrot.lane.b32.xlu2 %v515_v19, %s987_s23 }
 0x2c5   : > { %v494_v23 = vpop.f32.mrf.mxu1 }
 0x2c6   : > { %v516_v24 = vmul.f32 %v513_v21, %v494_v23  ;;  %v536_v25 = vmul.f32 %v533_v20, %v494_v23  ;;  %v556_v26 = vmul.f32 %v553_v22, %v494_v23  ;;  %v506_v35 = vmul.f32 %v503_v32, %v494_v23 }
 0x2c8   : > { %541 = vrot.lane.b32.xlu0 %v536_v25, %s986_s22  ;;  %521 = vrot.lane.b32.xlu1 %v516_v24, %s987_s23 }
 0x2c9   : > { %561 = vrot.lane.b32.xlu2 %v556_v26, %s985_s18 }
 0x2d0   : > { %559 = vrot.lane.b32.xlu0 %v555_v30, %s985_s18  ;;  %539 = vrot.lane.b32.xlu1 %v535_v29, %s986_s22 }
 0x2d1   : > { %577 = vrot.lane.b32.xlu2 %v1104_v1, %s996_s6 }
 0x2d8   : > { %575 = vrot.lane.b32.xlu1 %v1107_v2, %s996_s6  ;;  %572 = vperm.xlu0 %853, %v1104_v1  }
 0x2e0   : > { %568 = vperm.xlu1 %854, %v1107_v2  }
 0x316   : > { %v520_v34 = vpop.permute.xlu2 %519 }
 0x317   : > { %v525_v43 = vadd.f32 %v520_v34, %v505_v41 }
 0x323   : > { %v562_v40 = vpop.permute.xlu2 %561 }
 0x32b   : > { %v578_v1 = vpop.permute.xlu2 %577 }
 0x33a   : > { %v542_v36 = vpop.permute.xlu0 %541  ;;  %v522_v37 = vpop.permute.xlu1 %521 }
 0x33b   : > { %v526_v38 = vadd.f32 %v522_v37, %v506_v35 }
 0x33d   : > { %v546_v39 = vadd.f32 %v542_v36, %v526_v38 }
 0x33f   : > { %v566_v42 = vadd.f32 %v562_v40, %v546_v39 }
 0x341   : > { %597 = vmatpush.msra.mxu2 %v566_v42 }
 0x342   : > { %v540_v44 = vpop.permute.xlu1 %539  ;;  %v560_v46 = vpop.permute.xlu0 %559 }
 0x343   : > { %v545_v45 = vadd.f32 %v540_v44, %v525_v43 }
 0x345   : > { %v565_v47 = vadd.f32 %v560_v46, %v545_v45 }
 0x347   : > { %598 = vmatpush.msra.mxu2 %v565_v47 }
 0x34a   : > { %v576_v48 = vpop.permute.xlu1 %575  ;;  %v573_v52 = vpop.permute.xlu0 %572 }
 0x34b   : > { %743 = vmatmul.msk.f32.vlgmr.msra.gmra.mxu2 %vm263_vm12, %v576_v48 }
 0x352   : > { %v569_v2 = vpop.permute.xlu1 %568 }
 0x353   : > { %744 = vmatmul.msk.f32.gmra.mxu2 %vm263_vm12, %v578_v1 }
 0x3ce   : > { %v600_v49 = vpop.f32.mrf.mxu2 }
 0x3cf   : > { %v601_v50 = vadd.f32 %v600_v49, %v569_v2 }
 0x3d1   : > { %v608_v51 = vmin.f32 %v601_v50, 0.0  ;;  %vm606_vm2 = vcmp.gt.f32.partialorder %v601_v50, 0.0 }
 0x3d3   : > { %v610_v54 = vmul.f32 1.442695, %v608_v51 }
 0x3d5   : > { %867 = vpow2.f32 %v610_v54 }
 0x3d6   : > { %v603_v53 = vpop.f32.mrf.mxu2 }
 0x3d7   : > { %v604_v55 = vadd.f32 %v603_v53, %v573_v52 }
 0x3d9   : > { %v609_v56 = vmin.f32 %v604_v55, 0.0  ;;  %vm607_vm1 = vcmp.gt.f32.partialorder %v604_v55, 0.0 }
 0x3db   : > { %v612_v57 = vmul.f32 1.442695, %v609_v56  ;;  %v868_v58 = vpop.eup %867 }
 0x3dc   : > { %v745_v61 = vadd.f32 -1.0, %v868_v58 }
 0x3dd   : > { %869 = vpow2.f32 %v612_v57 }
 0x3de   : > { %v616_v0 = vsel %vm606_vm2, %v601_v50, %v745_v61 }
 0x3e3   : > { %v870_v59 = vpop.eup %869 }
 0x3e4   : > { %v746_v60 = vadd.f32 -1.0, %v870_v59 }
 0x3e6   : > { %v617_v62 = vsel %vm607_vm1, %v604_v55, %v746_v60 }
 0x3e7   : > { %635 = vmatpush.msra.mxu3 %v617_v62 }
 0x3e9   : > { %636 = vmatpush.msra.mxu3 %v616_v0 }
 0x3ea   : > { %747 = vmatmul.msk.f32.vlgmr.msra.gmra.mxu3 %vm263_vm12, %v190_v63 }
 0x46d   : > { %v638_v3 = vpop.f32.mrf.mxu3 }
 0x46e   : > { %v642_v4 = vsel %vm641_vm3, %v638_v3, 0.0 }
 0x46f   : > { %643 = vadd.xlane.f32.xlu2 %v642_v4 }
 0x4e2   : > { %v644_v5 = vpop.xlane.xlu2 %643 }
 0x4e3   : > { %v645_v6 = vmul.f32 0.125, %v644_v5 }
 0x4e5   : > { %647 = vst.msk [vmem:[%s180_s15] sm:$0xf] %vm646_vm4, %v645_v6 }
 0x4e6 PF: > { %p13_p4 = scmp.ge.s32.totalorder %s1056_s21, 4   ;;  %s1197_s9 = smov %s961_s10 }
 0x4e7   : > { %s1198_s10 = smov %s965_s11  ;;  %s1199_s11 = smov %s1069_s26 }
 0x4e8   : > { %s1200_s12 = smov %s1056_s21  ;;  %15 = sbr.rel (!%p13_p4) target bundleno = 4 (0x4), region = 72 }
 0x4ed   :  { %667 = vsyncpa [#allocation3], 1 }
 0x4ee   :  { %669 = vsyncpa [#allocation3 + $0x1], 1 }
 0x4ef   :  { %670 = vsyncpa [#allocation5], 1 }

</bundles_post_ra>
